<compile_context>
chip_gen: v6e
topology: v6e:2x2x1
jax: 0.10.0
libtpu: 0.0.40
codegen_flags: <defaults>
</compile_context>

<pallas_src>
import jax
import jax.numpy as jnp
import numpy as np
from jax.experimental import pallas as pl
from jax.experimental.pallas import tpu as pltpu


def hyconv_kernel(x_ref, h_ref, inv_v_ref, inv_e_ref, theta_ref, bias_ref, o_ref):
    # x_ref:     (NB*Vp, Cpi)  compute dtype (bf16/f32), V-padded, Cin ~unpadded
    # h_ref:     (NB, Vp, Ep)  1-byte storage (int8) or compute dtype
    # inv_v_ref: (NB, Vp, 1)   f32  1/deg_v (0 where deg == 0)
    # inv_e_ref: (NB, 1, Ep)   f32  1/deg_e (0 where deg == 0)
    # theta_ref: (Cpi, Cpo)    compute dtype
    # bias_ref:  (1, Cpo)      f32
    # o_ref:     (NB, Vp, Cpo) output dtype
    nb, vp, ep = h_ref.shape
    cdt = theta_ref.dtype                     # MXU compute dtype

    theta = theta_ref[...]                    # (Cpi, Cpo)
    bias = bias_ref[...]                      # (1, Cpo) f32

    # Projection for all NB batch elements as one MXU matmul (fills M dim).
    y_all = jnp.dot(x_ref[...], theta,
                    preferred_element_type=jnp.float32)        # (NB*Vp, Cpo) f32

    for i in range(nb):                       # NB is small & static -> unroll
        h = h_ref[i].astype(cdt)              # (Vp, Ep): 1-byte -> compute dtype
        y = y_all[i * vp:(i + 1) * vp].astype(cdt)             # (Vp, Cpo)

        # z = (H^T y)^T : transpose the small C-width matrix, never H.
        z = jnp.dot(y.T, h, preferred_element_type=jnp.float32)  # (Cpo, Ep)
        z = z * inv_e_ref[i]                  # De^{-1}  ((1, Ep) broadcast)
        y2 = z.astype(cdt).T                  # (Ep, Cpo) small transpose

        y3 = jnp.dot(h, y2, preferred_element_type=jnp.float32)  # (Vp, Cpo)
        y3 = y3 * inv_v_ref[i]                # Dv^{-1}  ((Vp, 1) broadcast)

        o_ref[i] = jnp.maximum(y3 + bias, 0.0).astype(o_ref.dtype)


def _round_up(v, m):
    return (v + m - 1) // m * m


def _vmem_capacity_bytes():
    try:
        cap = getattr(pltpu.get_tpu_info(), "vmem_capacity_bytes", None)
        if cap:
            return int(cap)
    except Exception:
        pass
    return 64 * 2 ** 20      # conservative fallback (v7x physical per-TC VMEM)


def hyconv_forward(x, H, theta, bias, *, compute_dtype=jnp.bfloat16,
                   h_dtype=jnp.int8):
    """HyConv forward (train=False, hyedge_weight=None).

    h_dtype=int8 stores the incidence at 1 byte/element (exact for the usual
    binary 0/1 incidence).  Pass jnp.float32 / compute_dtype for weighted H.
    Degrees are always computed in f32 in the wrapper, so they are exact even
    for weighted H.
    """
    N, V, Cin = x.shape
    _, _, E = H.shape
    Cout = theta.shape[1]
    out_dtype = x.dtype

    # Padding (zero padding is exact, see header):
    #   V -> 32 (int8 (32,128) / bf16 (16,128) sublane tiles), E -> 128 lanes,
    #   Cout -> 128 lanes (unmasked output stores), Cin -> minimal 8-alignment.
    Vp = _round_up(V, 32)
    Ep = _round_up(E, 128)
    Cpi = _round_up(Cin, 8)
    Cpo = _round_up(Cout, 128)

    # Inverse degrees in f32 (zero-degree guard: 0 instead of inf/NaN).
    Hf = H.astype(jnp.float32)
    deg_v = Hf.sum(-1)                                   # (N, V)
    deg_e = Hf.sum(1)                                    # (N, E)
    inv_v = jnp.where(deg_v > 0, 1.0 / deg_v, 0.0)
    inv_e = jnp.where(deg_e > 0, 1.0 / deg_e, 0.0)
    inv_v_p = jnp.pad(inv_v, ((0, 0), (0, Vp - V)))[:, :, None]   # (N, Vp, 1)
    inv_e_p = jnp.pad(inv_e, ((0, 0), (0, Ep - E)))[:, None, :]   # (N, 1, Ep)

    x_p = jnp.pad(x, ((0, 0), (0, Vp - V), (0, Cpi - Cin))).astype(compute_dtype)
    x_p = x_p.reshape(N * Vp, Cpi)                                # 2D, V-major
    h_p = jnp.pad(H, ((0, 0), (0, Vp - V), (0, Ep - E))).astype(h_dtype)
    theta_p = jnp.pad(theta, ((0, Cpi - Cin), (0, Cpo - Cout))).astype(compute_dtype)
    bias_p = jnp.pad(bias, (0, Cpo - Cout)).astype(jnp.float32).reshape(1, Cpo)

    # --- VMEM budget & batch-folding factor NB --------------------------------
    ex = np.dtype(compute_dtype).itemsize
    eh = np.dtype(h_dtype).itemsize
    eo = np.dtype(out_dtype).itemsize
    # Resident bytes per batch element: double-buffered pipeline in/out +
    # f32 intermediates + compute-dtype cast copies.
    per_elem = (2 * (Vp * Cpi * ex + Vp * Ep * eh + Vp * 4 + Ep * 4
                     + Vp * Cpo * eo)
                + Vp * Cpo * 4            # y_all slice (f32)
                + Vp * Ep * ex            # h upcast copy
                + Cpo * Ep * 4            # z (f32)
                + 2 * Ep * Cpo * ex       # z cast + y2 transpose
                + Vp * Cpo * 4)           # y3 (f32)
    shared = 2 * (Cpi * Cpo * ex + Cpo * 4)              # theta + bias buffers

    vmem_cap = _vmem_capacity_bytes()
    nb_budget = int(0.4 * vmem_cap) - shared
    nb = 1
    for cand in range(1, N + 1):
        if N % cand:
            continue
        if cand * per_elem > nb_budget:
            break
        nb = cand
        if cand * Vp >= 256:     # enough rows to fill the MXU M dimension
            break

    vmem_limit = int(min(max(shared + nb * per_elem + (8 << 20), 32 << 20),
                         int(0.85 * vmem_cap)))

    out_p = pl.pallas_call(
        hyconv_kernel,
        out_shape=jax.ShapeDtypeStruct((N, Vp, Cpo), out_dtype),
        grid_spec=pltpu.PrefetchScalarGridSpec(
            num_scalar_prefetch=0,
            grid=(N // nb,),
            in_specs=[
                pl.BlockSpec((nb * Vp, Cpi), lambda n: (n, 0)),
                pl.BlockSpec((nb, Vp, Ep), lambda n: (n, 0, 0)),
                pl.BlockSpec((nb, Vp, 1), lambda n: (n, 0, 0)),
                pl.BlockSpec((nb, 1, Ep), lambda n: (n, 0, 0)),
                pl.BlockSpec((Cpi, Cpo), lambda n: (0, 0)),
                pl.BlockSpec((1, Cpo), lambda n: (0, 0)),
            ],
            out_specs=pl.BlockSpec((nb, Vp, Cpo), lambda n: (n, 0, 0)),
        ),
        compiler_params=pltpu.CompilerParams(
            dimension_semantics=("parallel",),
            vmem_limit_bytes=vmem_limit,
        ),
    )(x_p, h_p, inv_v_p, inv_e_p, theta_p, bias_p)

    return out_p[:, :V, :Cout]


def hyconv_reference(x, H, theta, bias):
    # Pure-JAX reference matching the PyTorch forward (train=False, no hyedge_weight).
    y = jnp.einsum('nvc,co->nvo', x, theta)
    Dv_inv = 1.0 / H.sum(-1)                      # (N, V)
    De_inv = 1.0 / H.sum(1)                       # (N, E)
    HDv = H * Dv_inv[:, :, None]                  # (N, V, E)
    HDe = H * De_inv[:, None, :]                  # (N, V, E)
    y2 = jnp.einsum('nvc,nve->nec', y, HDe)       # (N, E, Cout)
    y3 = jnp.einsum('nec,nve->nvc', y2, HDv)      # (N, V, Cout)
    return jax.nn.relu(y3 + bias[None, None, :])


if __name__ == "__main__":
    key = jax.random.PRNGKey(0)
    k_x, k_h, k_theta, k_bias = jax.random.split(key, 4)

    # Small shapes consistent with the module: N batches, V vertices,
    # E hyperedges, in_ch -> out_ch channels.
    N, V, E = 2, 16, 8
    in_ch, out_ch = 8, 32

    x = jax.random.normal(k_x, (N, V, in_ch), dtype=jnp.float32)

    # Binary incidence matrix with guaranteed nonzero vertex/edge degrees.
    H = (jax.random.uniform(k_h, (N, V, E)) < 0.5).astype(jnp.float32)
    H = H.at[:, :, 0].set(1.0)   # every vertex touches edge 0
    H = H.at[:, 0, :].set(1.0)   # every edge touches vertex 0

    # Deterministic parameters (xavier_uniform-style theta, small bias).
    limit = float(np.sqrt(6.0 / (in_ch + out_ch)))
    theta = jax.random.uniform(k_theta, (in_ch, out_ch),
                               minval=-limit, maxval=limit, dtype=jnp.float32)
    bias = 0.1 * jax.random.normal(k_bias, (out_ch,), dtype=jnp.float32)

    ref = hyconv_reference(x, H, theta, bias)

    # Exact-precision path (f32 MXU operands, int8 binary H is exact): tight check.
    out_f32 = jax.block_until_ready(
        hyconv_forward(x, H, theta, bias, compute_dtype=jnp.float32))
    np.testing.assert_allclose(np.asarray(out_f32), np.asarray(ref),
                               rtol=1e-4, atol=1e-4)

    # Default fast path (bf16 MXU operands, f32 accumulation): loose check.
    out_bf16 = jax.block_until_ready(
        hyconv_forward(x, H, theta, bias, compute_dtype=jnp.bfloat16))
    np.testing.assert_allclose(np.asarray(out_bf16), np.asarray(ref),
                               rtol=5e-2, atol=5e-2)

    print("KERNEL_OK")
</pallas_src>

<mosaic_0001>
module attributes {stable_mosaic.version = 11 : i64} {
  func.func @hyconv_kernel(%arg0: i32, %arg1: memref<64x8xf32, #tpu.memory_space<vmem>>, %arg2: memref<2x32x128xi8, #tpu.memory_space<vmem>>, %arg3: memref<2x32x1xf32, #tpu.memory_space<vmem>>, %arg4: memref<2x1x128xf32, #tpu.memory_space<vmem>>, %arg5: memref<8x128xf32, #tpu.memory_space<vmem>>, %arg6: memref<1x128xf32, #tpu.memory_space<vmem>>, %arg7: memref<2x32x128xf32, #tpu.memory_space<vmem>>) attributes {dimension_semantics = [#tpu.dimension_semantics<parallel>], iteration_bounds = array<i64: 1>, scalar_prefetch = 0 : i64, scratch_operands = 0 : i64, tpu.core_type = #tpu.core_type<tc>, window_params = [{transform_indices = @transform_0, window_bounds = array<i64: 64, 8>}, {transform_indices = @transform_1, window_bounds = array<i64: 2, 32, 128>}, {transform_indices = @transform_2, window_bounds = array<i64: 2, 32, 1>}, {transform_indices = @transform_3, window_bounds = array<i64: 2, 1, 128>}, {pipeline_mode = #tpu.pipeline_mode<synchronous>, transform_indices = @transform_4, window_bounds = array<i64: 8, 128>}, {pipeline_mode = #tpu.pipeline_mode<synchronous>, transform_indices = @transform_5, window_bounds = array<i64: 1, 128>}, {transform_indices = @transform_6, window_bounds = array<i64: 2, 32, 128>}]} {
    %c0 = arith.constant 0 : index
    %c0_0 = arith.constant 0 : index
    %0 = vector.load %arg5[%c0, %c0_0] : memref<8x128xf32, #tpu.memory_space<vmem>>, vector<8x128xf32>
    %c0_1 = arith.constant 0 : index
    %c0_2 = arith.constant 0 : index
    %1 = vector.load %arg6[%c0_1, %c0_2] : memref<1x128xf32, #tpu.memory_space<vmem>>, vector<1x128xf32>
    %c0_3 = arith.constant 0 : index
    %c0_4 = arith.constant 0 : index
    %2 = vector.load %arg1[%c0_3, %c0_4] : memref<64x8xf32, #tpu.memory_space<vmem>>, vector<64x8xf32>
    %cst = arith.constant dense<0.000000e+00> : vector<64x128xf32>
    %3 = tpu.matmul %2, %0, %cst {dimension_numbers = #tpu.dot_dimension_numbers<[1], [0], [0], [1], [0, 0, 1, 1], [], []>} : vector<64x8xf32>, vector<8x128xf32>, vector<64x128xf32> -> vector<64x128xf32>
    %c0_5 = arith.constant 0 : index
    %c0_6 = arith.constant 0 : index
    %c0_7 = arith.constant 0 : index
    %4 = vector.load %arg2[%c0_5, %c0_6, %c0_7] : memref<2x32x128xi8, #tpu.memory_space<vmem>>, vector<1x32x128xi8>
    %5 = vector.shape_cast %4 : vector<1x32x128xi8> to vector<32x128xi8>
    %6 = arith.sitofp %5 : vector<32x128xi8> to vector<32x128xf32>
    %7 = vector.extract_strided_slice %3 {offsets = [0, 0], sizes = [32, 128], strides = [1, 1]} : vector<64x128xf32> to vector<32x128xf32>
    %8 = tpu.transpose %7, [1, 0] : vector<32x128xf32> -> vector<128x32xf32>
    %cst_8 = arith.constant dense<0.000000e+00> : vector<128x128xf32>
    %9 = tpu.matmul %8, %6, %cst_8 {dimension_numbers = #tpu.dot_dimension_numbers<[1], [0], [0], [1], [0, 0, 1, 1], [], []>} : vector<128x32xf32>, vector<32x128xf32>, vector<128x128xf32> -> vector<128x128xf32>
    %c0_9 = arith.constant 0 : index
    %c0_10 = arith.constant 0 : index
    %c0_11 = arith.constant 0 : index
    %10 = vector.load %arg4[%c0_9, %c0_10, %c0_11] : memref<2x1x128xf32, #tpu.memory_space<vmem>>, vector<1x1x128xf32>
    %11 = vector.shape_cast %10 : vector<1x1x128xf32> to vector<1x128xf32>
    %12 = vector.broadcast %11 : vector<1x128xf32> to vector<128x128xf32>
    %13 = arith.mulf %9, %12 : vector<128x128xf32>
    %14 = tpu.transpose %13, [1, 0] : vector<128x128xf32> -> vector<128x128xf32>
    %cst_12 = arith.constant dense<0.000000e+00> : vector<32x128xf32>
    %15 = tpu.matmul %6, %14, %cst_12 {dimension_numbers = #tpu.dot_dimension_numbers<[1], [0], [0], [1], [0, 0, 1, 1], [], []>} : vector<32x128xf32>, vector<128x128xf32>, vector<32x128xf32> -> vector<32x128xf32>
    %c0_13 = arith.constant 0 : index
    %c0_14 = arith.constant 0 : index
    %c0_15 = arith.constant 0 : index
    %16 = vector.load %arg3[%c0_13, %c0_14, %c0_15] : memref<2x32x1xf32, #tpu.memory_space<vmem>>, vector<1x32x1xf32>
    %17 = vector.shape_cast %16 : vector<1x32x1xf32> to vector<32x1xf32>
    %18 = vector.broadcast %17 : vector<32x1xf32> to vector<32x128xf32>
    %19 = arith.mulf %15, %18 : vector<32x128xf32>
    %20 = vector.broadcast %1 : vector<1x128xf32> to vector<32x128xf32>
    %21 = arith.addf %19, %20 : vector<32x128xf32>
    %cst_16 = arith.constant 0.000000e+00 : f32
    %22 = vector.broadcast %cst_16 : f32 to vector<32x128xf32>
    %23 = arith.maximumf %21, %22 : vector<32x128xf32>
    %c0_17 = arith.constant 0 : index
    %c0_18 = arith.constant 0 : index
    %c0_19 = arith.constant 0 : index
    %24 = vector.load %arg7[%c0_17, %c0_18, %c0_19] : memref<2x32x128xf32, #tpu.memory_space<vmem>>, vector<1x32x128xf32>
    %25 = vector.shape_cast %24 : vector<1x32x128xf32> to vector<32x128xf32>
    %26 = vector.shape_cast %23 : vector<32x128xf32> to vector<1x32x128xf32>
    tpu.vector_store %arg7[%c0_17, %c0_18, %c0_19], %26 {strides = array<i32>} : memref<2x32x128xf32, #tpu.memory_space<vmem>>, vector<1x32x128xf32>,
    %c1 = arith.constant 1 : index
    %c0_20 = arith.constant 0 : index
    %c0_21 = arith.constant 0 : index
    %27 = vector.load %arg2[%c1, %c0_20, %c0_21] : memref<2x32x128xi8, #tpu.memory_space<vmem>>, vector<1x32x128xi8>
    %28 = vector.shape_cast %27 : vector<1x32x128xi8> to vector<32x128xi8>
    %29 = arith.sitofp %28 : vector<32x128xi8> to vector<32x128xf32>
    %30 = vector.extract_strided_slice %3 {offsets = [32, 0], sizes = [32, 128], strides = [1, 1]} : vector<64x128xf32> to vector<32x128xf32>
    %31 = tpu.transpose %30, [1, 0] : vector<32x128xf32> -> vector<128x32xf32>
    %cst_22 = arith.constant dense<0.000000e+00> : vector<128x128xf32>
    %32 = tpu.matmul %31, %29, %cst_22 {dimension_numbers = #tpu.dot_dimension_numbers<[1], [0], [0], [1], [0, 0, 1, 1], [], []>} : vector<128x32xf32>, vector<32x128xf32>, vector<128x128xf32> -> vector<128x128xf32>
    %c1_23 = arith.constant 1 : index
    %c0_24 = arith.constant 0 : index
    %c0_25 = arith.constant 0 : index
    %33 = vector.load %arg4[%c1_23, %c0_24, %c0_25] : memref<2x1x128xf32, #tpu.memory_space<vmem>>, vector<1x1x128xf32>
    %34 = vector.shape_cast %33 : vector<1x1x128xf32> to vector<1x128xf32>
    %35 = vector.broadcast %34 : vector<1x128xf32> to vector<128x128xf32>
    %36 = arith.mulf %32, %35 : vector<128x128xf32>
    %37 = tpu.transpose %36, [1, 0] : vector<128x128xf32> -> vector<128x128xf32>
    %cst_26 = arith.constant dense<0.000000e+00> : vector<32x128xf32>
    %38 = tpu.matmul %29, %37, %cst_26 {dimension_numbers = #tpu.dot_dimension_numbers<[1], [0], [0], [1], [0, 0, 1, 1], [], []>} : vector<32x128xf32>, vector<128x128xf32>, vector<32x128xf32> -> vector<32x128xf32>
    %c1_27 = arith.constant 1 : index
    %c0_28 = arith.constant 0 : index
    %c0_29 = arith.constant 0 : index
    %39 = vector.load %arg3[%c1_27, %c0_28, %c0_29] : memref<2x32x1xf32, #tpu.memory_space<vmem>>, vector<1x32x1xf32>
    %40 = vector.shape_cast %39 : vector<1x32x1xf32> to vector<32x1xf32>
    %41 = vector.broadcast %40 : vector<32x1xf32> to vector<32x128xf32>
    %42 = arith.mulf %38, %41 : vector<32x128xf32>
    %43 = vector.broadcast %1 : vector<1x128xf32> to vector<32x128xf32>
    %44 = arith.addf %42, %43 : vector<32x128xf32>
    %cst_30 = arith.constant 0.000000e+00 : f32
    %45 = vector.broadcast %cst_30 : f32 to vector<32x128xf32>
    %46 = arith.maximumf %44, %45 : vector<32x128xf32>
    %c1_31 = arith.constant 1 : index
    %c0_32 = arith.constant 0 : index
    %c0_33 = arith.constant 0 : index
    %47 = vector.load %arg7[%c1_31, %c0_32, %c0_33] : memref<2x32x128xf32, #tpu.memory_space<vmem>>, vector<1x32x128xf32>
    %48 = vector.shape_cast %47 : vector<1x32x128xf32> to vector<32x128xf32>
    %49 = vector.shape_cast %46 : vector<32x128xf32> to vector<1x32x128xf32>
    tpu.vector_store %arg7[%c1_31, %c0_32, %c0_33], %49 {strides = array<i32>} : memref<2x32x128xf32, #tpu.memory_space<vmem>>, vector<1x32x128xf32>,
    return
  }
  func.func @transform_0(%arg0: i32) -> (i32, i32) {
    %c0_i32 = arith.constant 0 : i32
    %c0_i32_0 = arith.constant 0 : i32
    return %arg0, %c0_i32 : i32, i32
  }
  func.func @transform_1(%arg0: i32) -> (i32, i32, i32) {
    %c0_i32 = arith.constant 0 : i32
    %c0_i32_0 = arith.constant 0 : i32
    %c0_i32_1 = arith.constant 0 : i32
    return %arg0, %c0_i32, %c0_i32_0 : i32, i32, i32
  }
  func.func @transform_2(%arg0: i32) -> (i32, i32, i32) {
    %c0_i32 = arith.constant 0 : i32
    %c0_i32_0 = arith.constant 0 : i32
    %c0_i32_1 = arith.constant 0 : i32
    return %arg0, %c0_i32, %c0_i32_0 : i32, i32, i32
  }
  func.func @transform_3(%arg0: i32) -> (i32, i32, i32) {
    %c0_i32 = arith.constant 0 : i32
    %c0_i32_0 = arith.constant 0 : i32
    %c0_i32_1 = arith.constant 0 : i32
    return %arg0, %c0_i32, %c0_i32_0 : i32, i32, i32
  }
  func.func @transform_4(%arg0: i32) -> (i32, i32) {
    %c0_i32 = arith.constant 0 : i32
    %c0_i32_0 = arith.constant 0 : i32
    %c0_i32_1 = arith.constant 0 : i32
    return %c0_i32, %c0_i32_0 : i32, i32
  }
  func.func @transform_5(%arg0: i32) -> (i32, i32) {
    %c0_i32 = arith.constant 0 : i32
    %c0_i32_0 = arith.constant 0 : i32
    %c0_i32_1 = arith.constant 0 : i32
    return %c0_i32, %c0_i32_0 : i32, i32
  }
  func.func @transform_6(%arg0: i32) -> (i32, i32, i32) {
    %c0_i32 = arith.constant 0 : i32
    %c0_i32_0 = arith.constant 0 : i32
    %c0_i32_1 = arith.constant 0 : i32
    return %arg0, %c0_i32, %c0_i32_0 : i32, i32, i32
  }
}

</mosaic_0001>

<bundles_post_ra>
// kernel: tpu_custom_call.1
= control target key start
LH: loop header
LB: loop body
LE: loop exit
PB: predicated region body
PF: predicated region fallthrough
CT: control target
= control target key end

     0   :  { %vm34_vm0 = vcmask 64512   ;;  %s1542_s0 = inlined_call_operand.vmem [shape: f32[64,8], index: 0, kind: input, shape index: {}]   ;;  %s1543_s1 = inlined_call_operand.vmem [shape: s8[2,32,128], index: 1, kind: input, shape index: {}]   ;;  %s1544_s2 = inlined_call_operand.vmem [shape: f32[2,32,1], index: 2, kind: input, shape index: {}]   ;;  %s1545_s3 = inlined_call_operand.vmem [shape: f32[2,1,128], index: 3, kind: input, shape index: {}]   ;;  %s1546_s4 = inlined_call_operand.vmem [shape: f32[8,128], index: 4, kind: input, shape index: {}]   ;;  %s1547_s5 = inlined_call_operand.vmem [shape: f32[1,128], index: 5, kind: input, shape index: {}]   ;;  %s1548_s6 = inlined_call_operand.hbm [shape: f32[2,32,128], index: 6, kind: output, shape index: {}]  }
   0x1   :  { %v24_v0 = vld [vmem:[%s1546_s4] sm:$0xff]  ;;  %v27_v3 = vld [vmem:[%s1542_s0 + $0x8] sm:$0xff]  ;;  %v28_v5 = vld [vmem:[%s1542_s0 + $0x10] sm:$0xff] }
   0x2   :  { %v26_v1 = vld [vmem:[%s1542_s0] sm:$0xff]  ;;  %1093 = vmatprep.subr.mxu0 %v24_v0  ;;  %1263 = vmatprep.subr.mxu1 %v24_v0  ;;  %v31_v4 = vld [vmem:[%s1542_s0 + $0x28] sm:$0xff]  ;;  %v32_v6 = vld [vmem:[%s1542_s0 + $0x30] sm:$0xff] }
   0x3   :  { %v30_v2 = vld [vmem:[%s1542_s0 + $0x20] sm:$0xff]  ;;  %1094 = vmatpush3.msra.mxu0 %v24_v0  ;;  %1264 = vmatpush3.msra.mxu1 %v24_v0 }
   0x4   :  { %1095 = vmatprep.mubr.msk.f32.mxu0 %vm34_vm0, %v26_v1  ;;  %1101 = vmatprep.mubr.msk.f32.mxu1 %vm34_vm0, %v30_v2 }
   0x5   :  { %11 = vsyncpa [#allocation3], 0  ;;  %1096 = vmatmul.mubr.msk.f32.vlgmr.msra.gmra.mxu0 %vm34_vm0, %v27_v3  ;;  %1102 = vmatmul.mubr.msk.f32.vlgmr.msra.gmra.mxu1 %vm34_vm0, %v31_v4  ;;  %v29_v7 = vld [vmem:[%s1542_s0 + $0x18] sm:$0xff]  ;;  %v1371_v9 = vld [vmem:[%s1543_s1] sm:$0xff]  ;;  %vm205_vm1 = vcmask 261120   ;;  %v1294_v60 = vmov 0  }
   0x6   :  { %1098 = vmatprep.mubr.msk.f32.mxu0 %vm34_vm0, %v28_v5  ;;  %1104 = vmatprep.mubr.msk.f32.mxu1 %vm34_vm0, %v32_v6  ;;  %v33_v8 = vld [vmem:[%s1542_s0 + $0x38] sm:$0xff]  ;;  %v1376_v10 = vld [vmem:[%s1543_s1 + $0x8] sm:$0xff]  ;;  %v1247_v11 = vunpack.c.h.s8.bf16 %v1371_v9  ;;  %v1251_v13 = vunpack.c.l.s8.bf16 %v1371_v9  ;;  %v165_v55 = vunpack.c.0.s8 %v1371_v9  ;;  %v507_v61 = vld [vmem:[%s1544_s2] sm:$0xff] }
   0x7   :  { %v1255_v12 = vunpack.c.h.s8.bf16 %v1376_v10  ;;  %v1259_v14 = vunpack.c.l.s8.bf16 %v1376_v10  ;;  %v555_v56 = vunpack.c.0.s8 %v1376_v10  ;;  %v508_v59 = vld [vmem:[%s1544_s2 + $0x8] sm:$0xff]  ;;  %v509_v62 = vld [vmem:[%s1544_s2 + $0x10] sm:$0xff]  ;;  %v510_v0 = vld [vmem:[%s1544_s2 + $0x18] sm:$0xff] }
   0x8   :  { %1248 = vmatprep.subr.bf16.mxu0 %v1247_v11  ;;  %v169_v57 = vcvt.s32.f32 %v165_v55  ;;  %v1001_v63 = vld [vmem:[%s1544_s2 + $0x28] sm:$0xff]  ;;  %v1003_v1 = vld [vmem:[%s1544_s2 + $0x38] sm:$0xff]  ;;  %v1000_v2 = vld [vmem:[%s1544_s2 + $0x20] sm:$0xff] }
   0x9   :  { %1099 = vmatmul.mubr.msk.f32.gmra.mxu0 %vm34_vm0, %v29_v7  ;;  %1105 = vmatmul.mubr.msk.f32.gmra.mxu1 %vm34_vm0, %v33_v8  ;;  %v559_v58 = vcvt.s32.f32 %v555_v56  ;;  %v1002_v5 = vld [vmem:[%s1544_s2 + $0x30] sm:$0xff] }
   0xa   :  { %1256 = vmatprep.subr.bf16.mxu1 %v1255_v12  ;;  %1250 = vmatpush3.bf16.msra.mxu0 %v1247_v11 }
   0xb   :  { %1258 = vmatpush3.bf16.msra.mxu1 %v1255_v12  ;;  %1252 = vmatprep.subr.bf16.mxu0 %v1251_v13 }
   0xc   :  { %1260 = vmatprep.subr.bf16.mxu1 %v1259_v14 }
   0xe   :  { %1254 = vmatpush3.bf16.msra.mxu0 %v1251_v13 }
   0xf   :  { %1262 = vmatpush3.bf16.msra.mxu1 %v1259_v14 }
  0xc5   :  { %v1097_v15 = vpop.f32.mrf.mxu0  ;;  %v1103_v16 = vpop.f32.mrf.mxu1 }
  0xc7   :  { %v125_v17 = vpop.f32.mrf.mxu0  ;;  %v145_v18 = vpop.f32.mrf.mxu1 }
  0xc8   :  { %563 = vxpose.xlu1.b32.start [1/4] (short) %v145_v18, 128  ;;  %173 = vxpose.xlu0.b32.start [1/4] (short) %v125_v17, 128 }
  0xc9   :  { %v1100_v19 = vpop.f32.mrf.mxu0  ;;  %v1106_v20 = vpop.f32.mrf.mxu1 }
  0xcb   :  { %v135_v21 = vpop.f32.mrf.mxu0  ;;  %v155_v22 = vpop.f32.mrf.mxu1 }
  0xcc   :  { %564 = vxpose.xlu1.b32.cont [2/4] (short) %v1103_v16, 128  ;;  %174 = vxpose.xlu0.b32.cont [2/4] (short) %v1097_v15, 128 }
  0xd0   :  { %565 = vxpose.xlu1.b32.cont [3/4] (short) %v155_v22, 128  ;;  %175 = vxpose.xlu0.b32.cont [3/4] (short) %v135_v21, 128 }
  0xd4   :  { %566 = vxpose.xlu1.b32.end [4/4] (short) %v1106_v20, 128  ;;  %176 = vxpose.xlu0.b32.end [4/4] (short) %v1100_v19, 128 }
  0xf2   :  { %1271 = vset.pattern.permute.xlu1 %v1294_v60 }
  0xfd   :  { %1270 = vset.pattern.permute.xlu0 %v1294_v60 }
 0x122   :  { %518 = vperm.xlu1 %1271, %v508_v59  }
 0x126   :  { %523 = vperm.xlu1 %1271, %v509_v62  }
 0x12a   :  { %528 = vperm.xlu1 %1271, %v510_v0  }
 0x12d   :  { %513 = vperm.xlu0 %1270, %v507_v61  }
 0x12e   :  { %904 = vperm.xlu1 %1271, %v1000_v2  }
 0x131   :  { %909 = vperm.xlu0 %1270, %v1001_v63  }
 0x132   :  { %914 = vperm.xlu1 %1271, %v1002_v5  }
 0x135   :  { %919 = vperm.xlu0 %1270, %v1003_v1  }
 0x144   :  { %v579_v23 = vpop.trf.xlu1  ;;  %v189_v24 = vpop.trf.xlu0 }
 0x145   :  { %1115 = vmatprep.mubr.msk.f32.mxu0 %vm205_vm1, %v189_v24  ;;  %1185 = vmatprep.mubr.msk.f32.mxu1 %vm205_vm1, %v579_v23 }
 0x148   :  { %v580_v25 = vpop.trf.xlu1  ;;  %v190_v26 = vpop.trf.xlu0 }
 0x149   :  { %1116 = vmatmul.mubr.msk.f32.vlgmr.msra.gmra.mxu0 %vm205_vm1, %v190_v26  ;;  %1186 = vmatmul.mubr.msk.f32.vlgmr.msra.gmra.mxu1 %vm205_vm1, %v580_v25 }
 0x14c   :  { %v581_v27 = vpop.trf.xlu1  ;;  %v191_v28 = vpop.trf.xlu0 }
 0x14d   :  { %1118 = vmatprep.mubr.msk.f32.mxu0 %vm205_vm1, %v191_v28  ;;  %1188 = vmatprep.mubr.msk.f32.mxu1 %vm205_vm1, %v581_v27 }
 0x150   :  { %v582_v29 = vpop.trf.xlu1  ;;  %v192_v30 = vpop.trf.xlu0 }
 0x151   :  { %1119 = vmatmul.mubr.msk.f32.gmra.mxu0 %vm205_vm1, %v192_v30  ;;  %1189 = vmatmul.mubr.msk.f32.gmra.mxu1 %vm205_vm1, %v582_v29 }
 0x154   :  { %v583_v31 = vpop.trf.xlu1  ;;  %v193_v32 = vpop.trf.xlu0 }
 0x155   :  { %1121 = vmatprep.mubr.msk.f32.mxu0 %vm205_vm1, %v193_v32  ;;  %1191 = vmatprep.mubr.msk.f32.mxu1 %vm205_vm1, %v583_v31 }
 0x158   :  { %v584_v33 = vpop.trf.xlu1  ;;  %v194_v34 = vpop.trf.xlu0 }
 0x159   :  { %1122 = vmatmul.mubr.msk.f32.gmra.mxu0 %vm205_vm1, %v194_v34  ;;  %1192 = vmatmul.mubr.msk.f32.gmra.mxu1 %vm205_vm1, %v584_v33  ;;  %v1475_v34 = vld [vmem:[%s1545_s3] ss:$0 sm:$0xff] }
 0x15c   :  { %v585_v35 = vpop.trf.xlu1  ;;  %v195_v36 = vpop.trf.xlu0 }
 0x15d   :  { %1124 = vmatprep.mubr.msk.f32.mxu0 %vm205_vm1, %v195_v36  ;;  %1194 = vmatprep.mubr.msk.f32.mxu1 %vm205_vm1, %v585_v35  ;;  %v1480_v35 = vld [vmem:[%s1545_s3 + $0x1] ss:$0 sm:$0xff] }
 0x160   :  { %v586_v37 = vpop.trf.xlu1  ;;  %v196_v38 = vpop.trf.xlu0 }
 0x161   :  { %1125 = vmatmul.mubr.msk.f32.gmra.mxu0 %vm205_vm1, %v196_v38  ;;  %1195 = vmatmul.mubr.msk.f32.gmra.mxu1 %vm205_vm1, %v586_v37 }
 0x164   :  { %v587_v39 = vpop.trf.xlu1  ;;  %v197_v40 = vpop.trf.xlu0 }
 0x165   :  { %1127 = vmatprep.mubr.msk.f32.mxu0 %vm205_vm1, %v197_v40  ;;  %1197 = vmatprep.mubr.msk.f32.mxu1 %vm205_vm1, %v587_v39 }
 0x168   :  { %v588_v41 = vpop.trf.xlu1  ;;  %v198_v42 = vpop.trf.xlu0 }
 0x169   :  { %1128 = vmatmul.mubr.msk.f32.gmra.mxu0 %vm205_vm1, %v198_v42  ;;  %1198 = vmatmul.mubr.msk.f32.gmra.mxu1 %vm205_vm1, %v588_v41 }
 0x16c   :  { %v589_v43 = vpop.trf.xlu1  ;;  %v199_v44 = vpop.trf.xlu0 }
 0x16d   :  { %1130 = vmatprep.mubr.msk.f32.mxu0 %vm205_vm1, %v199_v44  ;;  %1200 = vmatprep.mubr.msk.f32.mxu1 %vm205_vm1, %v589_v43 }
 0x170   :  { %v590_v45 = vpop.trf.xlu1  ;;  %v200_v46 = vpop.trf.xlu0 }
 0x171   :  { %1131 = vmatmul.mubr.msk.f32.gmra.mxu0 %vm205_vm1, %v200_v46  ;;  %1201 = vmatmul.mubr.msk.f32.gmra.mxu1 %vm205_vm1, %v590_v45 }
 0x174   :  { %v591_v47 = vpop.trf.xlu1  ;;  %v201_v48 = vpop.trf.xlu0 }
 0x175   :  { %1133 = vmatprep.mubr.msk.f32.mxu0 %vm205_vm1, %v201_v48  ;;  %1203 = vmatprep.mubr.msk.f32.mxu1 %vm205_vm1, %v591_v47 }
 0x178   :  { %v592_v49 = vpop.trf.xlu1  ;;  %v202_v50 = vpop.trf.xlu0 }
 0x179   :  { %1134 = vmatmul.mubr.msk.f32.gmra.mxu0 %vm205_vm1, %v202_v50  ;;  %1204 = vmatmul.mubr.msk.f32.gmra.mxu1 %vm205_vm1, %v592_v49 }
 0x17c   :  { %v593_v51 = vpop.trf.xlu1  ;;  %v203_v52 = vpop.trf.xlu0 }
 0x17d   :  { %1136 = vmatprep.mubr.msk.f32.mxu0 %vm205_vm1, %v203_v52  ;;  %1206 = vmatprep.mubr.msk.f32.mxu1 %vm205_vm1, %v593_v51 }
 0x180   :  { %v594_v53 = vpop.trf.xlu1  ;;  %v204_v54 = vpop.trf.xlu0 }
 0x181   :  { %1137 = vmatmul.mubr.msk.f32.gmra.mxu0 %vm205_vm1, %v204_v54  ;;  %1207 = vmatmul.mubr.msk.f32.gmra.mxu1 %vm205_vm1, %v594_v53 }
 0x182   :  { %1171 = vmatprep.mubr.f32.mxu0 %v169_v57  ;;  %1241 = vmatprep.mubr.f32.mxu1 %v559_v58 }
 0x209   :  { %v1437_v3 = vpop.f32.mrf.mxu0  ;;  %v1439_v4 = vpop.f32.mrf.mxu1 }
 0x20b   :  { %v1444_v6 = vpop.f32.mrf.mxu0  ;;  %v1446_v7 = vpop.f32.mrf.mxu1 }
 0x211   :  { %v1448_v8 = vpop.f32.mrf.mxu0  ;;  %v1450_v11 = vpop.f32.mrf.mxu1 }
 0x212   :  { %v409_v0 = vmul.f32 %v1448_v8, %v1475_v34  ;;  %v799_v1 = vmul.f32 %v1450_v11, %v1480_v35  ;;  %v407_v8 = vmul.f32 %v1437_v3, %v1475_v34  ;;  %v797_v11 = vmul.f32 %v1439_v4, %v1480_v35 }
 0x213   :  { %v1452_v12 = vpop.f32.mrf.mxu0  ;;  %v1454_v13 = vpop.f32.mrf.mxu1  ;;  %v167_v3 = vunpack.c.2.s8 %v1371_v9  ;;  %v557_v4 = vunpack.c.2.s8 %v1376_v10 }
 0x214   :  { %v408_v2 = vmul.f32 %v1475_v34, %v1452_v12  ;;  %v798_v5 = vmul.f32 %v1480_v35, %v1454_v13  ;;  %v406_v12 = vmul.f32 %v1475_v34, %v1444_v6  ;;  %v796_v13 = vmul.f32 %v1480_v35, %v1446_v7 }
 0x215   :  { %v558_v6 = vunpack.c.3.s8 %v1376_v10  ;;  %v171_v7 = vcvt.s32.f32 %v167_v3 }
 0x219   :  { %v1456_v14 = vpop.f32.mrf.mxu0  ;;  %v1458_v15 = vpop.f32.mrf.mxu1 }
 0x21a   :  { %v411_v60 = vmul.f32 %v1456_v14, %v1475_v34  ;;  %v801_v61 = vmul.f32 %v1458_v15, %v1480_v35  ;;  %v166_v14 = vunpack.c.1.s8 %v1371_v9  ;;  %v556_v15 = vunpack.c.1.s8 %v1376_v10  ;;  %v980_v10 = vld [vmem:[%s1547_s5] ss:$0 sm:$0xff]  ;;  %s1295_s5 = smov [#allocation2]  }
 0x21b   :  { %v1460_v16 = vpop.f32.mrf.mxu0  ;;  %v1462_v17 = vpop.f32.mrf.mxu1  ;;  %s944_s11 = sshll.u32 %s1295_s5, 4  ;;  %s945_s11 = int_to_ptr.vmem [resolvable:$true] %s944_s11 }
 0x21c   :  { %v410_v62 = vmul.f32 %v1475_v34, %v1460_v16  ;;  %v800_v63 = vmul.f32 %v1480_v35, %v1462_v17  ;;  %v170_v16 = vcvt.s32.f32 %v166_v14  ;;  %v560_v17 = vcvt.s32.f32 %v556_v15  ;;  %s1272_s12 = scalar_lea.vmem %s945_s11, 1024  ;;  %p1277_p1 = scmp.lt.s32.totalorder %s945_s11, %s945_s11 }
 0x21d   :  { %p1273_p0 = scmp.ne.s32.totalorder %s945_s11, %s1272_s12  ;;  %p1278_p2 = scmp.lt.s32.totalorder %s1272_s12, %s1272_s12 }
 0x21f   :  { %p1279_p3 = por %p1278_p2, %p1277_p1 }
 0x221   :  { %v1464_v18 = vpop.f32.mrf.mxu0  ;;  %v1466_v19 = vpop.f32.mrf.mxu1  ;;  %p1280_p4 = pnand %p1279_p3, %p1273_p0 }
 0x222   :  { %v413_v56 = vmul.f32 %v1464_v18, %v1475_v34  ;;  %v803_v57 = vmul.f32 %v1466_v19, %v1480_v35  ;;  %v168_v18 = vunpack.c.3.s8 %v1371_v9  ;;  %v561_v19 = vcvt.s32.f32 %v557_v4 }
 0x223   :  { %v1468_v20 = vpop.f32.mrf.mxu0  ;;  %v1470_v21 = vpop.f32.mrf.mxu1 }
 0x224   :  { %v412_v58 = vmul.f32 %v1475_v34, %v1468_v20  ;;  %v802_v59 = vmul.f32 %v1480_v35, %v1470_v21  ;;  %v172_v20 = vcvt.s32.f32 %v168_v18  ;;  %v562_v21 = vcvt.s32.f32 %v558_v6 }
 0x229   :  { %v1129_v22 = vpop.f32.mrf.mxu0  ;;  %v1199_v23 = vpop.f32.mrf.mxu1 }
 0x22a   :  { %v415_v52 = vmul.f32 %v1129_v22, %v1475_v34  ;;  %v805_v53 = vmul.f32 %v1199_v23, %v1480_v35  ;;  %v519_v22 = vpop.permute.xlu1 %518 }
 0x22b   :  { %v360_v24 = vpop.f32.mrf.mxu0  ;;  %v749_v25 = vpop.f32.mrf.mxu1 }
 0x22c   :  { %v414_v54 = vmul.f32 %v1475_v34, %v360_v24  ;;  %v804_v55 = vmul.f32 %v1480_v35, %v749_v25  ;;  %v514_v25 = vpop.permute.xlu0 %513 }
 0x22e   :  { %v524_v23 = vpop.permute.xlu1 %523 }
 0x230   :  { %v910_v9 = vpop.permute.xlu0 %909 }
 0x231   :  { %v1132_v26 = vpop.f32.mrf.mxu0  ;;  %v1202_v27 = vpop.f32.mrf.mxu1 }
 0x232   :  { %v417_v48 = vmul.f32 %v1132_v26, %v1475_v34  ;;  %v807_v49 = vmul.f32 %v1202_v27, %v1480_v35  ;;  %v529_v24 = vpop.permute.xlu1 %528 }
 0x233   :  { %v370_v28 = vpop.f32.mrf.mxu0  ;;  %v759_v29 = vpop.f32.mrf.mxu1 }
 0x234   :  { %v416_v50 = vmul.f32 %v1475_v34, %v370_v28  ;;  %v806_v51 = vmul.f32 %v1480_v35, %v759_v29 }
 0x236   :  { %v905_v26 = vpop.permute.xlu1 %904 }
 0x239   :  { %v1135_v30 = vpop.f32.mrf.mxu0  ;;  %v1205_v31 = vpop.f32.mrf.mxu1 }
 0x23a   :  { %v419_v44 = vmul.f32 %v1135_v30, %v1475_v34  ;;  %v809_v45 = vmul.f32 %v1205_v31, %v1480_v35 }
 0x23b   :  { %v380_v32 = vpop.f32.mrf.mxu0  ;;  %v769_v33 = vpop.f32.mrf.mxu1 }
 0x23c   :  { %v418_v46 = vmul.f32 %v1475_v34, %v380_v32  ;;  %v808_v47 = vmul.f32 %v1480_v35, %v769_v33 }
 0x241   :  { %v1138_v36 = vpop.f32.mrf.mxu0  ;;  %v1208_v37 = vpop.f32.mrf.mxu1 }
 0x242   :  { %v421_v38 = vmul.f32 %v1138_v36, %v1475_v34  ;;  %v811_v39 = vmul.f32 %v1208_v37, %v1480_v35 }
 0x243   :  { %v390_v40 = vpop.f32.mrf.mxu0  ;;  %v779_v41 = vpop.f32.mrf.mxu1 }
 0x244   :  { %v420_v42 = vmul.f32 %v1475_v34, %v390_v40  ;;  %v810_v43 = vmul.f32 %v1480_v35, %v779_v41  ;;  %1139 = vmatprep.subr.mxu0 %v421_v38  ;;  %1209 = vmatprep.subr.mxu1 %v811_v39  ;;  %v920_v40 = vpop.permute.xlu0 %919 }
 0x245   :  { %1140 = vmatpush3.xpose.msra.mxu0 %v421_v38  ;;  %1210 = vmatpush3.xpose.msra.mxu1 %v811_v39  ;;  %v915_v39 = vpop.permute.xlu1 %914 }
 0x246   :  { %1141 = vmatprep.subr.mxu0 %v420_v42  ;;  %1211 = vmatprep.subr.mxu1 %v810_v43 }
 0x249   :  { %1142 = vmatpush3.xpose.msra.mxu0 %v420_v42  ;;  %1212 = vmatpush3.xpose.msra.mxu1 %v810_v43 }
 0x24a   :  { %1143 = vmatprep.subr.mxu0 %v419_v44  ;;  %1213 = vmatprep.subr.mxu1 %v809_v45 }
 0x24d   :  { %1144 = vmatpush3.xpose.msra.mxu0 %v419_v44  ;;  %1214 = vmatpush3.xpose.msra.mxu1 %v809_v45 }
 0x24e   :  { %1145 = vmatprep.subr.mxu0 %v418_v46  ;;  %1215 = vmatprep.subr.mxu1 %v808_v47 }
 0x251   :  { %1146 = vmatpush3.xpose.msra.mxu0 %v418_v46  ;;  %1216 = vmatpush3.xpose.msra.mxu1 %v808_v47 }
 0x252   :  { %1147 = vmatprep.subr.mxu0 %v417_v48  ;;  %1217 = vmatprep.subr.mxu1 %v807_v49 }
 0x255   :  { %1148 = vmatpush3.xpose.msra.mxu0 %v417_v48  ;;  %1218 = vmatpush3.xpose.msra.mxu1 %v807_v49 }
 0x256   :  { %1149 = vmatprep.subr.mxu0 %v416_v50  ;;  %1219 = vmatprep.subr.mxu1 %v806_v51 }
 0x259   :  { %1150 = vmatpush3.xpose.msra.mxu0 %v416_v50  ;;  %1220 = vmatpush3.xpose.msra.mxu1 %v806_v51 }
 0x25a   :  { %1151 = vmatprep.subr.mxu0 %v415_v52  ;;  %1221 = vmatprep.subr.mxu1 %v805_v53 }
 0x25d   :  { %1152 = vmatpush3.xpose.msra.mxu0 %v415_v52  ;;  %1222 = vmatpush3.xpose.msra.mxu1 %v805_v53 }
 0x25e   :  { %1153 = vmatprep.subr.mxu0 %v414_v54  ;;  %1223 = vmatprep.subr.mxu1 %v804_v55 }
 0x261   :  { %1154 = vmatpush3.xpose.msra.mxu0 %v414_v54  ;;  %1224 = vmatpush3.xpose.msra.mxu1 %v804_v55 }
 0x262   :  { %1155 = vmatprep.subr.mxu0 %v413_v56  ;;  %1225 = vmatprep.subr.mxu1 %v803_v57 }
 0x265   :  { %1156 = vmatpush3.xpose.msra.mxu0 %v413_v56  ;;  %1226 = vmatpush3.xpose.msra.mxu1 %v803_v57 }
 0x266   :  { %1157 = vmatprep.subr.mxu0 %v412_v58  ;;  %1227 = vmatprep.subr.mxu1 %v802_v59 }
 0x269   :  { %1158 = vmatpush3.xpose.msra.mxu0 %v412_v58  ;;  %1228 = vmatpush3.xpose.msra.mxu1 %v802_v59 }
 0x26a   :  { %1159 = vmatprep.subr.mxu0 %v411_v60  ;;  %1229 = vmatprep.subr.mxu1 %v801_v61 }
 0x26d   :  { %1160 = vmatpush3.xpose.msra.mxu0 %v411_v60  ;;  %1230 = vmatpush3.xpose.msra.mxu1 %v801_v61 }
 0x26e   :  { %1161 = vmatprep.subr.mxu0 %v410_v62  ;;  %1231 = vmatprep.subr.mxu1 %v800_v63 }
 0x271   :  { %1162 = vmatpush3.xpose.msra.mxu0 %v410_v62  ;;  %1232 = vmatpush3.xpose.msra.mxu1 %v800_v63 }
 0x272   :  { %1163 = vmatprep.subr.mxu0 %v409_v0  ;;  %1233 = vmatprep.subr.mxu1 %v799_v1 }
 0x275   :  { %1164 = vmatpush3.xpose.msra.mxu0 %v409_v0  ;;  %1234 = vmatpush3.xpose.msra.mxu1 %v799_v1 }
 0x276   :  { %1165 = vmatprep.subr.mxu0 %v408_v2  ;;  %1235 = vmatprep.subr.mxu1 %v798_v5 }
 0x279   :  { %1166 = vmatpush3.xpose.msra.mxu0 %v408_v2  ;;  %1236 = vmatpush3.xpose.msra.mxu1 %v798_v5 }
 0x27a   :  { %1167 = vmatprep.subr.mxu0 %v407_v8  ;;  %1237 = vmatprep.subr.mxu1 %v797_v11 }
 0x27d   :  { %1168 = vmatpush3.xpose.msra.mxu0 %v407_v8  ;;  %1238 = vmatpush3.xpose.msra.mxu1 %v797_v11 }
 0x27e   :  { %1169 = vmatprep.subr.mxu0 %v406_v12  ;;  %1239 = vmatprep.subr.mxu1 %v796_v13 }
 0x281   :  { %1170 = vmatpush3.xpose.msra.mxu0 %v406_v12  ;;  %1240 = vmatpush3.xpose.msra.mxu1 %v796_v13 }
 0x284   :  { %1172 = vmatmul.mubr.f32.vlgmr.msra.gmra.mxu0 %v170_v16  ;;  %1242 = vmatmul.mubr.f32.vlgmr.msra.gmra.mxu1 %v560_v17 }
 0x285   :  { %1174 = vmatprep.mubr.f32.mxu0 %v171_v7  ;;  %1244 = vmatprep.mubr.f32.mxu1 %v561_v19 }
 0x288   :  { %1175 = vmatmul.mubr.f32.gmra.mxu0 %v172_v20  ;;  %1245 = vmatmul.mubr.f32.gmra.mxu1 %v562_v21 }
 0x344   :  { %v1173_v27 = vpop.f32.mrf.mxu0  ;;  %v1243_v28 = vpop.f32.mrf.mxu1 }
 0x345   :  { %v532_v29 = vmul.f32 %v1173_v27, %v519_v22  ;;  %v923_v30 = vmul.f32 %v1243_v28, %v910_v9 }
 0x346   :  { %v488_v31 = vpop.f32.mrf.mxu0  ;;  %v878_v32 = vpop.f32.mrf.mxu1 }
 0x347   :  { %v542_v33 = vadd.f32 %v980_v10, %v532_v29  ;;  %v927_v34 = vadd.f32 %v980_v10, %v923_v30  ;;  %v531_v35 = vmul.f32 %v514_v25, %v488_v31  ;;  %v922_v36 = vmul.f32 %v905_v26, %v878_v32 }
 0x348   :  { %v1176_v37 = vpop.f32.mrf.mxu0  ;;  %v1246_v38 = vpop.f32.mrf.mxu1 }
 0x349   :  { %v546_v41 = vmax.f32 %v542_v33, 0.0  ;;  %v931_v42 = vmax.f32 %v927_v34, 0.0  ;;  %v541_v43 = vadd.f32 %v980_v10, %v531_v35  ;;  %v926_v44 = vadd.f32 %v980_v10, %v922_v36 }
 0x34a   :  { %v534_v45 = vmul.f32 %v1176_v37, %v529_v24  ;;  %v925_v46 = vmul.f32 %v1246_v38, %v920_v40  ;;  %v498_v47 = vpop.f32.mrf.mxu0  ;;  %v888_v48 = vpop.f32.mrf.mxu1 }
 0x34b   :  { %550 = vst [vmem:[#allocation2 + $0x8] sm:$0xff] %v546_v41  ;;  %936 = vst [vmem:[#allocation2 + $0x28] sm:$0xff] %v931_v42  ;;  %v545_v49 = vmax.f32 %v541_v43, 0.0  ;;  %v930_v50 = vmax.f32 %v926_v44, 0.0  ;;  %v533_v51 = vmul.f32 %v524_v23, %v498_v47  ;;  %v924_v52 = vmul.f32 %v915_v39, %v888_v48 }
 0x34c   :  { %v544_v53 = vadd.f32 %v980_v10, %v534_v45  ;;  %v929_v54 = vadd.f32 %v980_v10, %v925_v46 }
 0x34d   :  { %549 = vst [vmem:[#allocation2] sm:$0xff] %v545_v49  ;;  %935 = vst [vmem:[#allocation2 + $0x20] sm:$0xff] %v930_v50  ;;  %v543_v55 = vadd.f32 %v980_v10, %v533_v51  ;;  %v928_v56 = vadd.f32 %v980_v10, %v924_v52 }
 0x34e   :  { %v548_v57 = vmax.f32 %v544_v53, 0.0  ;;  %v933_v58 = vmax.f32 %v929_v54, 0.0 }
 0x34f   :  { %v547_v59 = vmax.f32 %v543_v55, 0.0  ;;  %v932_v60 = vmax.f32 %v928_v56, 0.0 }
 0x350   :  { %552 = vst [vmem:[#allocation2 + $0x18] sm:$0xff] %v548_v57  ;;  %938 = vst [vmem:[#allocation2 + $0x38] sm:$0xff] %v933_v58 }
 0x351   :  { %551 = vst [vmem:[#allocation2 + $0x10] sm:$0xff] %v547_v59  ;;  %937 = vst [vmem:[#allocation2 + $0x30] sm:$0xff] %v932_v60 }
 0x352   :  { %1283 = shalt.err (!%p1280_p4)
}
 0x353   :  { %s1296_s13 = smov 128   ;;  %s1297_s14 = smov 8  }
 0x354   :  { %950 = dma.vmem_to_hbm [thread:$0]  %s945_s11, 1024, %s1548_s6, [#allocation3], %s1296_s13, %s1296_s13, %s1297_s14  }
 0x355   :  { %1292 = dma.done.wait [#allocation3], 1024  }
 0x356   :  { %1293 = vsyncadd [#allocation3], 4294966272 }
 0x357   :  { %954 = vsyncpa [#allocation3], 1 }

</bundles_post_ra>
